<compile_context>
chip_gen: v5e
topology: v5e:2x2
jax: 0.10.0
libtpu: 0.0.40
codegen_flags: <defaults>
</compile_context>

<pallas_src>
import jax
import jax.numpy as jnp
from jax.experimental import pallas as pl
from jax.experimental.pallas import tpu as pltpu

NEG_SLOPE = 0.01     # nn.LeakyReLU default
BN_EPS = 1e-5        # nn.BatchNorm1d default
L2_EPS = 1e-12       # F.normalize default (clamps the norm, i.e. sumsq >= eps^2)
NEG_BIG = -1e30      # bias for padded (fake) output classes -> softmax weight 0
LANES = 128          # native lane width; hidden/output are zero-padded to this


def _round_up(n, m):
    return ((n + m - 1) // m) * m


# ---------------------------------------------------------------------------
# Packed-parameter layout (ONE lane-dense (n_rows, 128) f32 slab, built once):
#   rows [off_w1 : off_w1+in ]   -> W1   (in, 128)   cols [hidden:] zero
#   rows [off_w2 : off_w2+128]   -> W2   (128, 128)  zero-padded rows/cols
#   rows [off_wo : off_wo+128]   -> Wo   (128, 128)  zero-padded rows/cols
#   row   off_vec + 0            -> bo   (128,)  real classes then NEG_BIG pad
#   rows  off_vec + 1..4         -> g1, be1, g2, be2  (128,) zero-padded
# b1/b2 are intentionally absent (cancelled by training-mode BN).
# ---------------------------------------------------------------------------
def compute_offsets(input_size, hidden, output_size):
    assert hidden <= LANES and output_size <= LANES
    off_w1 = 0
    off_w2 = _round_up(input_size, 8)
    off_wo = off_w2 + LANES
    off_vec = off_wo + LANES
    n_rows = off_vec + 8
    return dict(off_w1=off_w1, off_w2=off_w2, off_wo=off_wo,
                off_vec=off_vec, n_rows=n_rows)


def pack_params(p, input_size, hidden, output_size, offs):
    """One-time parameter packing (hoisted out of the forward path)."""
    packed = jnp.zeros((offs["n_rows"], LANES), jnp.float32)
    packed = packed.at[offs["off_w1"]:offs["off_w1"] + input_size, :hidden].set(p["w1"])
    packed = packed.at[offs["off_w2"]:offs["off_w2"] + hidden, :hidden].set(p["w2"])
    packed = packed.at[offs["off_wo"]:offs["off_wo"] + hidden, :output_size].set(p["wo"])
    bo_row = jnp.full((LANES,), NEG_BIG, jnp.float32).at[:output_size].set(p["bo"])
    packed = packed.at[offs["off_vec"] + 0, :].set(bo_row)
    packed = packed.at[offs["off_vec"] + 1, :hidden].set(p["g1"])
    packed = packed.at[offs["off_vec"] + 2, :hidden].set(p["be1"])
    packed = packed.at[offs["off_vec"] + 3, :hidden].set(p["g2"])
    packed = packed.at[offs["off_vec"] + 4, :hidden].set(p["be2"])
    return packed


def _bn_lrelu(h, gamma, beta):
    # Training-mode BatchNorm1d (batch stats, biased var) fused into sub + FMA,
    # followed by LeakyReLU.  gamma/beta are (1,128); padded lanes have
    # gamma=beta=0 so padded activations stay exactly 0.
    mean = jnp.mean(h, axis=0, keepdims=True)
    d = h - mean
    var = jnp.mean(d * d, axis=0, keepdims=True)
    scale = gamma * jax.lax.rsqrt(var + BN_EPS)       # (1, 128)
    hn = d * scale + beta
    return jnp.where(hn > 0, hn, NEG_SLOPE * hn)


def make_kernel(input_size, offs):
    off_w1 = offs["off_w1"]
    off_w2 = offs["off_w2"]
    off_wo = offs["off_wo"]
    off_vec = offs["off_vec"]

    def kernel(x_ref, wp_ref, out_ref):
        x = x_ref[...].astype(jnp.float32)

        # F.normalize: L2 along features; clamp sumsq >= eps^2 == clamp norm >= eps
        ss = jnp.sum(x * x, axis=1, keepdims=True)
        x = x * jax.lax.rsqrt(jnp.maximum(ss, L2_EPS * L2_EPS))

        # Static, full-lane-width slices out of the single packed tile.
        w1 = wp_ref[off_w1:off_w1 + input_size, :]        # (in, 128)
        w2 = wp_ref[off_w2:off_w2 + LANES, :]             # (128, 128)
        wo = wp_ref[off_wo:off_wo + LANES, :]             # (128, 128)
        vecs = wp_ref[off_vec:off_vec + 8, :]             # one aligned (8,128) tile
        bo = vecs[0:1, :]
        g1 = vecs[1:2, :]
        be1 = vecs[2:3, :]
        g2 = vecs[3:4, :]
        be2 = vecs[4:5, :]

        # block 1: Linear (bias folded into BN) -> BN -> LeakyReLU
        h = jnp.dot(x, w1, preferred_element_type=jnp.float32)
        h = _bn_lrelu(h, g1, be1)

        # block 2 (single surviving "hidden" block): Linear -> BN -> LeakyReLU
        h = jnp.dot(h, w2, preferred_element_type=jnp.float32)
        h = _bn_lrelu(h, g2, be2)

        # output layer + softmax over classes; padded classes have bias -1e30
        # so exp() -> 0 and the lane-dense (N, 128) store stays exact.
        logits = jnp.dot(h, wo, preferred_element_type=jnp.float32) + bo
        m = jnp.max(logits, axis=1, keepdims=True)
        e = jnp.exp(logits - m)
        denom = jnp.sum(e, axis=1, keepdims=True)
        out_ref[...] = e / denom                          # exact normalization

    return kernel


def make_forward(input_size, hidden, output_size):
    """Builds (pack_fn, forward_fn). pack_fn is called ONCE at init."""
    offs = compute_offsets(input_size, hidden, output_size)
    kernel = make_kernel(input_size, offs)
    n_rows = offs["n_rows"]

    @jax.jit
    def forward(x, packed):
        n = x.shape[0]
        flops = 2 * n * LANES * (input_size + 2 * LANES) + 32 * n * LANES
        transcendentals = n * (LANES + 1) + 2 * LANES
        bytes_accessed = 4 * (n * input_size + n_rows * LANES + n * LANES)
        vmem = pl.BlockSpec(memory_space=pltpu.MemorySpace.VMEM)
        out_pad = pl.pallas_call(
            kernel,
            out_shape=jax.ShapeDtypeStruct((n, LANES), jnp.float32),
            in_specs=[vmem, vmem],
            out_specs=vmem,
            cost_estimate=pl.CostEstimate(
                flops=flops,
                transcendentals=transcendentals,
                bytes_accessed=bytes_accessed),
        )(x.astype(jnp.float32), packed)
        # Tiny slice; drop it if the consumer can take the padded (N,128) slab.
        return out_pad[:, :output_size]

    def pack(p):
        return pack_params(p, input_size, hidden, output_size, offs)

    return pack, forward


def init_params(key, input_size, hidden, output_size):
    ks = jax.random.split(key, 8)
    return {
        "w1": jax.random.normal(ks[0], (input_size, hidden), jnp.float32) * 0.1,
        "b1": jax.random.normal(ks[1], (hidden,), jnp.float32) * 0.01,   # cancelled by BN
        "g1": 1.0 + 0.1 * jax.random.normal(ks[2], (hidden,), jnp.float32),
        "be1": 0.1 * jax.random.normal(ks[3], (hidden,), jnp.float32),
        "w2": jax.random.normal(ks[4], (hidden, hidden), jnp.float32) * 0.1,
        "b2": jax.random.normal(ks[5], (hidden,), jnp.float32) * 0.01,   # cancelled by BN
        "g2": 1.0 + 0.1 * jax.random.normal(ks[6], (hidden,), jnp.float32),
        "be2": 0.1 * jax.random.normal(ks[7], (hidden,), jnp.float32),
        "wo": jax.random.normal(jax.random.fold_in(key, 100),
                                (hidden, output_size), jnp.float32) * 0.1,
        "bo": jax.random.normal(jax.random.fold_in(key, 101),
                                (output_size,), jnp.float32) * 0.01,
    }


# Pure-JAX reference (includes b1/b2, sqrt+divide, unpadded weights) to check
# that bias folding / fused BN / lane padding are exact transformations.
def reference_forward(x, p):
    x = x.astype(jnp.float32)
    norm = jnp.sqrt(jnp.sum(x * x, axis=1, keepdims=True))
    x = x / jnp.maximum(norm, L2_EPS)

    def block(h, w, b, g, be):
        h = h @ w + b
        mean = jnp.mean(h, axis=0, keepdims=True)
        var = jnp.mean((h - mean) ** 2, axis=0, keepdims=True)
        hn = (h - mean) / jnp.sqrt(var + BN_EPS) * g + be
        return jnp.where(hn > 0, hn, NEG_SLOPE * hn)

    h = block(x, p["w1"], p["b1"], p["g1"], p["be1"])
    h = block(h, p["w2"], p["b2"], p["g2"], p["be2"])
    logits = h @ p["wo"] + p["bo"]
    return jax.nn.softmax(logits, axis=1)


if __name__ == "__main__":
    BATCH = 8
    INPUT_SIZE = 16
    HIDDEN = 32
    OUTPUT_SIZE = 4

    key = jax.random.PRNGKey(0)
    kx, kp = jax.random.split(key)
    x = jax.random.normal(kx, (BATCH, INPUT_SIZE), jnp.float32)
    params = init_params(kp, INPUT_SIZE, HIDDEN, OUTPUT_SIZE)

    # Build once; pack params once (hoisted out of the per-call path).
    pack, forward = make_forward(INPUT_SIZE, HIDDEN, OUTPUT_SIZE)
    packed = jax.block_until_ready(pack(params))

    out = forward(x, packed)
    out = jax.block_until_ready(out)
    ref = reference_forward(x, params)

    assert out.shape == (BATCH, OUTPUT_SIZE)
    # exact softmax normalization -> rows sum to 1 within f32 rounding
    assert bool(jnp.allclose(jnp.sum(out, axis=1), 1.0, atol=1e-5))
    # matches the unfused reference (which still carries the cancelled biases)
    assert bool(jnp.allclose(out, ref, atol=2e-3, rtol=2e-3))
    print("KERNEL_OK")
</pallas_src>

<mosaic_0001>
module attributes {stable_mosaic.version = 11 : i64} {
  func.func @kernel(%arg0: memref<8x16xf32, #tpu.memory_space<vmem>>, %arg1: memref<280x128xf32, #tpu.memory_space<vmem>>, %arg2: memref<8x128xf32, #tpu.memory_space<vmem>>) attributes {dimension_semantics = [], scalar_prefetch = 0 : i64, scratch_operands = 0 : i64, tpu.core_type = #tpu.core_type<tc>} {
    %c0 = arith.constant 0 : index
    %c0_0 = arith.constant 0 : index
    %0 = vector.load %arg0[%c0, %c0_0] : memref<8x16xf32, #tpu.memory_space<vmem>>, vector<8x16xf32>
    %1 = arith.mulf %0, %0 : vector<8x16xf32>
    %cst = arith.constant dense<0.000000e+00> : vector<8xf32>
    %2 = vector.multi_reduction <add>, %1, %cst [1] : vector<8x16xf32> to vector<8xf32>
    %3 = vector.shape_cast %2 : vector<8xf32> to vector<8x1xf32>
    %cst_1 = arith.constant 1.000000e-24 : f32
    %4 = vector.broadcast %cst_1 : f32 to vector<8x1xf32>
    %5 = arith.maximumf %3, %4 : vector<8x1xf32>
    %6 = math.rsqrt %5 : vector<8x1xf32>
    %7 = vector.broadcast %6 : vector<8x1xf32> to vector<8x16xf32>
    %8 = arith.mulf %0, %7 : vector<8x16xf32>
    %c0_2 = arith.constant 0 : index
    %c0_3 = arith.constant 0 : index
    %9 = vector.load %arg1[%c0_2, %c0_3] : memref<280x128xf32, #tpu.memory_space<vmem>>, vector<16x128xf32>
    %c16 = arith.constant 16 : index
    %c0_4 = arith.constant 0 : index
    %10 = vector.load %arg1[%c16, %c0_4] : memref<280x128xf32, #tpu.memory_space<vmem>>, vector<128x128xf32>
    %c144 = arith.constant 144 : index
    %c0_5 = arith.constant 0 : index
    %11 = vector.load %arg1[%c144, %c0_5] : memref<280x128xf32, #tpu.memory_space<vmem>>, vector<128x128xf32>
    %c272 = arith.constant 272 : index
    %c0_6 = arith.constant 0 : index
    %12 = vector.load %arg1[%c272, %c0_6] : memref<280x128xf32, #tpu.memory_space<vmem>>, vector<8x128xf32>
    %13 = vector.extract_strided_slice %12 {offsets = [0, 0], sizes = [1, 128], strides = [1, 1]} : vector<8x128xf32> to vector<1x128xf32>
    %14 = vector.extract_strided_slice %12 {offsets = [1, 0], sizes = [1, 128], strides = [1, 1]} : vector<8x128xf32> to vector<1x128xf32>
    %15 = vector.extract_strided_slice %12 {offsets = [2, 0], sizes = [1, 128], strides = [1, 1]} : vector<8x128xf32> to vector<1x128xf32>
    %16 = vector.extract_strided_slice %12 {offsets = [3, 0], sizes = [1, 128], strides = [1, 1]} : vector<8x128xf32> to vector<1x128xf32>
    %17 = vector.extract_strided_slice %12 {offsets = [4, 0], sizes = [1, 128], strides = [1, 1]} : vector<8x128xf32> to vector<1x128xf32>
    %cst_7 = arith.constant dense<0.000000e+00> : vector<8x128xf32>
    %18 = tpu.matmul %8, %9, %cst_7 {dimension_numbers = #tpu.dot_dimension_numbers<[1], [0], [0], [1], [0, 0, 1, 1], [], []>} : vector<8x16xf32>, vector<16x128xf32>, vector<8x128xf32> -> vector<8x128xf32>
    %cst_8 = arith.constant dense<0.000000e+00> : vector<128xf32>
    %19 = vector.multi_reduction <add>, %18, %cst_8 [0] : vector<8x128xf32> to vector<128xf32>
    %20 = vector.shape_cast %19 : vector<128xf32> to vector<1x128xf32>
    %cst_9 = arith.constant 8.000000e+00 : f32
    %21 = vector.broadcast %cst_9 : f32 to vector<1x128xf32>
    %22 = arith.divf %20, %21 : vector<1x128xf32>
    %23 = vector.broadcast %22 : vector<1x128xf32> to vector<8x128xf32>
    %24 = arith.subf %18, %23 : vector<8x128xf32>
    %25 = arith.mulf %24, %24 : vector<8x128xf32>
    %cst_10 = arith.constant dense<0.000000e+00> : vector<128xf32>
    %26 = vector.multi_reduction <add>, %25, %cst_10 [0] : vector<8x128xf32> to vector<128xf32>
    %27 = vector.shape_cast %26 : vector<128xf32> to vector<1x128xf32>
    %cst_11 = arith.constant 8.000000e+00 : f32
    %28 = vector.broadcast %cst_11 : f32 to vector<1x128xf32>
    %29 = arith.divf %27, %28 : vector<1x128xf32>
    %cst_12 = arith.constant 9.99999974E-6 : f32
    %30 = vector.broadcast %cst_12 : f32 to vector<1x128xf32>
    %31 = arith.addf %29, %30 : vector<1x128xf32>
    %32 = math.rsqrt %31 : vector<1x128xf32>
    %33 = arith.mulf %14, %32 : vector<1x128xf32>
    %34 = vector.broadcast %33 : vector<1x128xf32> to vector<8x128xf32>
    %35 = arith.mulf %24, %34 : vector<8x128xf32>
    %36 = vector.broadcast %15 : vector<1x128xf32> to vector<8x128xf32>
    %37 = arith.addf %35, %36 : vector<8x128xf32>
    %cst_13 = arith.constant 0.000000e+00 : f32
    %38 = vector.broadcast %cst_13 : f32 to vector<8x128xf32>
    %39 = arith.cmpf ogt, %37, %38 : vector<8x128xf32>
    %cst_14 = arith.constant 0.00999999977 : f32
    %40 = vector.broadcast %cst_14 : f32 to vector<8x128xf32>
    %41 = arith.mulf %40, %37 : vector<8x128xf32>
    %42 = arith.select %39, %37, %41 : vector<8x128xi1>, vector<8x128xf32>
    %cst_15 = arith.constant dense<0.000000e+00> : vector<8x128xf32>
    %43 = tpu.matmul %42, %10, %cst_15 {dimension_numbers = #tpu.dot_dimension_numbers<[1], [0], [0], [1], [0, 0, 1, 1], [], []>} : vector<8x128xf32>, vector<128x128xf32>, vector<8x128xf32> -> vector<8x128xf32>
    %cst_16 = arith.constant dense<0.000000e+00> : vector<128xf32>
    %44 = vector.multi_reduction <add>, %43, %cst_16 [0] : vector<8x128xf32> to vector<128xf32>
    %45 = vector.shape_cast %44 : vector<128xf32> to vector<1x128xf32>
    %cst_17 = arith.constant 8.000000e+00 : f32
    %46 = vector.broadcast %cst_17 : f32 to vector<1x128xf32>
    %47 = arith.divf %45, %46 : vector<1x128xf32>
    %48 = vector.broadcast %47 : vector<1x128xf32> to vector<8x128xf32>
    %49 = arith.subf %43, %48 : vector<8x128xf32>
    %50 = arith.mulf %49, %49 : vector<8x128xf32>
    %cst_18 = arith.constant dense<0.000000e+00> : vector<128xf32>
    %51 = vector.multi_reduction <add>, %50, %cst_18 [0] : vector<8x128xf32> to vector<128xf32>
    %52 = vector.shape_cast %51 : vector<128xf32> to vector<1x128xf32>
    %cst_19 = arith.constant 8.000000e+00 : f32
    %53 = vector.broadcast %cst_19 : f32 to vector<1x128xf32>
    %54 = arith.divf %52, %53 : vector<1x128xf32>
    %cst_20 = arith.constant 9.99999974E-6 : f32
    %55 = vector.broadcast %cst_20 : f32 to vector<1x128xf32>
    %56 = arith.addf %54, %55 : vector<1x128xf32>
    %57 = math.rsqrt %56 : vector<1x128xf32>
    %58 = arith.mulf %16, %57 : vector<1x128xf32>
    %59 = vector.broadcast %58 : vector<1x128xf32> to vector<8x128xf32>
    %60 = arith.mulf %49, %59 : vector<8x128xf32>
    %61 = vector.broadcast %17 : vector<1x128xf32> to vector<8x128xf32>
    %62 = arith.addf %60, %61 : vector<8x128xf32>
    %cst_21 = arith.constant 0.000000e+00 : f32
    %63 = vector.broadcast %cst_21 : f32 to vector<8x128xf32>
    %64 = arith.cmpf ogt, %62, %63 : vector<8x128xf32>
    %cst_22 = arith.constant 0.00999999977 : f32
    %65 = vector.broadcast %cst_22 : f32 to vector<8x128xf32>
    %66 = arith.mulf %65, %62 : vector<8x128xf32>
    %67 = arith.select %64, %62, %66 : vector<8x128xi1>, vector<8x128xf32>
    %cst_23 = arith.constant dense<0.000000e+00> : vector<8x128xf32>
    %68 = tpu.matmul %67, %11, %cst_23 {dimension_numbers = #tpu.dot_dimension_numbers<[1], [0], [0], [1], [0, 0, 1, 1], [], []>} : vector<8x128xf32>, vector<128x128xf32>, vector<8x128xf32> -> vector<8x128xf32>
    %69 = vector.broadcast %13 : vector<1x128xf32> to vector<8x128xf32>
    %70 = arith.addf %68, %69 : vector<8x128xf32>
    %cst_24 = arith.constant dense<0xFF800000> : vector<8xf32>
    %71 = vector.multi_reduction <maximumf>, %70, %cst_24 [1] : vector<8x128xf32> to vector<8xf32>
    %72 = vector.shape_cast %71 : vector<8xf32> to vector<8x1xf32>
    %73 = vector.broadcast %72 : vector<8x1xf32> to vector<8x128xf32>
    %74 = arith.subf %70, %73 : vector<8x128xf32>
    %75 = math.exp %74 : vector<8x128xf32>
    %cst_25 = arith.constant dense<0.000000e+00> : vector<8xf32>
    %76 = vector.multi_reduction <add>, %75, %cst_25 [1] : vector<8x128xf32> to vector<8xf32>
    %77 = vector.shape_cast %76 : vector<8xf32> to vector<8x1xf32>
    %78 = vector.broadcast %77 : vector<8x1xf32> to vector<8x128xf32>
    %79 = arith.divf %75, %78 : vector<8x128xf32>
    %c0_26 = arith.constant 0 : index
    %c0_27 = arith.constant 0 : index
    %80 = vector.load %arg2[%c0_26, %c0_27] : memref<8x128xf32, #tpu.memory_space<vmem>>, vector<8x128xf32>
    tpu.vector_store %arg2[%c0_26, %c0_27], %79 {strides = array<i32>} : memref<8x128xf32, #tpu.memory_space<vmem>>, vector<8x128xf32>,
    return
  }
}

</mosaic_0001>

<bundles_post_ra>
// kernel: forward.1
= control target key start
LH: loop header
LB: loop body
LE: loop exit
PB: predicated region body
PF: predicated region fallthrough
CT: control target
= control target key end

     0   :  { %7 = vsyncpa [#allocation3], 0  ;;  %s378_s0 = inlined_call_operand.hbm [shape: f32[8,16], index: 0, kind: input, shape index: {}]   ;;  %s379_s1 = inlined_call_operand.hbm [shape: f32[280,128], index: 1, kind: input, shape index: {}]   ;;  %s380_s2 = inlined_call_operand.vmem [shape: f32[8,128], index: 2, kind: output, shape index: {}]  }
   0x1   :  { %s14_s11 = sshll.u32 %s378_s0, 4  ;;  %s15_s11 = int_to_ptr.hbm [resolvable:$true] %s14_s11 }
   0x2   :  { %8 = vsyncpa [#allocation5], 0  ;;  %s334_s12 = smov [#allocation2]   ;;  %s24_s16 = sshll.u32 %s379_s1, 4  ;;  %s25_s16 = int_to_ptr.hbm [resolvable:$true] %s24_s16 }
   0x3   :  { %s16_s13 = sshll.u32 %s334_s12, 4  ;;  %s335_s17 = smov [#allocation4]   ;;  %s17_s13 = int_to_ptr.vmem [resolvable:$true] %s16_s13 }
   0x4   :  { %19 = dma.hbm_to_vmem [thread:$0]  %s15_s11, 128, %s17_s13, [#allocation3]  }
   0x5   :  { %s26_s18 = sshll.u32 %s335_s17, 4  ;;  %s336_s19 = smov 128   ;;  %s27_s18 = int_to_ptr.vmem [resolvable:$true] %s26_s18 }
   0x6   :  { %s337_s20 = smov 8  }
   0x7   :  { %32 = dma.hbm_to_vmem [thread:$0]  %s25_s16, 4480, %s27_s18, [#allocation5], %s336_s19, %s336_s19, %s337_s20  }
   0x8   :  { %330 = dma.done.wait [#allocation3], 128  }
   0x9   :  { %331 = vsyncadd [#allocation3], 4294967168 }
   0xa   :  { %332 = dma.done.wait [#allocation5], 4480  }
   0xb   :  { %333 = vsyncadd [#allocation5], 4294962816  ;;  %v41_v0 = vld [vmem:[#allocation2] sm:$0xff]  ;;  %vm43_vm0 = vcmask 130048   ;;  %v60_v3 = vld [vmem:[#allocation4 + $0x8] sm:$0xff]  ;;  %v338_v15 = vmov 8.0  }
   0xc   :  { %v42_v1 = vmul.f32 %v41_v0, %v41_v0  ;;  %v59_v4 = vld [vmem:[#allocation4] sm:$0xff]  ;;  %111 = vmatpush.msra.mxu0 %v60_v3  ;;  %v76_v20 = vld [vmem:[#allocation4 + $0x88] sm:$0xff]  ;;  %v74_v25 = vld [vmem:[#allocation4 + $0x78] sm:$0xff] }
   0xd   :  { %159 = vmatpush.msra.mxu1 %v76_v20  ;;  %v75_v23 = vld [vmem:[#allocation4 + $0x80] sm:$0xff]  ;;  %v73_v28 = vld [vmem:[#allocation4 + $0x70] sm:$0xff]  ;;  %v72_v30 = vld [vmem:[#allocation4 + $0x68] sm:$0xff] }
   0xe   :  { %v44_v2 = vsel %vm43_vm0, %v42_v1, 0.0  ;;  %112 = vmatpush.msra.mxu0 %v59_v4  ;;  %v71_v33 = vld [vmem:[#allocation4 + $0x60] sm:$0xff]  ;;  %v70_v35 = vld [vmem:[#allocation4 + $0x58] sm:$0xff]  ;;  %v69_v37 = vld [vmem:[#allocation4 + $0x50] sm:$0xff] }
   0xf   :  { %45 = vadd.xlane.f32.xlu0 %v44_v2  ;;  %160 = vmatpush.msra.mxu1 %v75_v23  ;;  %v68_v39 = vld [vmem:[#allocation4 + $0x48] sm:$0xff]  ;;  %v67_v41 = vld [vmem:[#allocation4 + $0x40] sm:$0xff]  ;;  %v66_v43 = vld [vmem:[#allocation4 + $0x38] sm:$0xff] }
  0x10   :  { %v65_v45 = vld [vmem:[#allocation4 + $0x30] sm:$0xff]  ;;  %v64_v47 = vld [vmem:[#allocation4 + $0x28] sm:$0xff]  ;;  %v63_v49 = vld [vmem:[#allocation4 + $0x20] sm:$0xff] }
  0x11   :  { %161 = vmatpush.msra.mxu1 %v74_v25  ;;  %v62_v50 = vld [vmem:[#allocation4 + $0x18] sm:$0xff]  ;;  %v61_v52 = vld [vmem:[#allocation4 + $0x10] sm:$0xff] }
  0x12   :  { %v366_v61 = vld [vmem:[#allocation4 + $0x110] sm:$0xff]  ;;  %v86_v20 = vld [vmem:[#allocation4 + $0xd8] sm:$0xff] }
  0x13   :  { %162 = vmatpush.msra.mxu1 %v73_v28  ;;  %v154_v2 = vperm.slane %v366_v61, 2  ;;  %v82_v28 = vld [vmem:[#allocation4 + $0xb8] sm:$0xff] }
  0x15   :  { %163 = vmatpush.msra.mxu1 %v72_v30  ;;  %v81_v30 = vld [vmem:[#allocation4 + $0xb0] sm:$0xff] }
  0x17   :  { %164 = vmatpush.msra.mxu1 %v71_v33  ;;  %v80_v33 = vld [vmem:[#allocation4 + $0xa8] sm:$0xff] }
  0x19   :  { %165 = vmatpush.msra.mxu1 %v70_v35  ;;  %v79_v35 = vld [vmem:[#allocation4 + $0xa0] sm:$0xff] }
  0x1b   :  { %166 = vmatpush.msra.mxu1 %v69_v37 }
  0x1d   :  { %167 = vmatpush.msra.mxu1 %v68_v39 }
  0x1f   :  { %168 = vmatpush.msra.mxu1 %v67_v41 }
  0x21   :  { %169 = vmatpush.msra.mxu1 %v66_v43 }
  0x23   :  { %170 = vmatpush.msra.mxu1 %v65_v45 }
  0x25   :  { %171 = vmatpush.msra.mxu1 %v64_v47 }
  0x27   :  { %172 = vmatpush.msra.mxu1 %v63_v49 }
  0x29   :  { %173 = vmatpush.msra.mxu1 %v62_v50 }
  0x2b   :  { %174 = vmatpush.msra.mxu1 %v61_v52 }
  0x82   :  { %v46_v5 = vpop.xlane.xlu0 %45 }
  0x83   :  { %v47_v6 = vmax.f32 %v46_v5, 1e-24 }
  0x85   :  { %270 = vrsqrt.f32 %v47_v6  ;;  %vm54_vm2 = vweird.f32 %v47_v6 }
  0x86   :  { %272 = vrcp.f32 %v338_v15 }
  0x8b   :  { %v271_v7 = vpop.eup %270 }
  0x8c   :  { %v49_v8 = vmul.f32 %v271_v7, %v47_v6  ;;  %vm55_vm1 = vweird.f32 %v271_v7  ;;  %v273_v16 = vpop.eup %272 }
  0x8d   :  { %vm56_vm3 = vmor %vm54_vm2, %vm55_vm1  ;;  %v124_v17 = vmul.f32 8.0, %v273_v16  ;;  %vm128_vm4 = vweird.f32 %v273_v16 }
  0x8e   :  { %v50_v9 = vmul.f32 %v271_v7, %v49_v8  ;;  %v92_v8 = vld [vmem:[#allocation4 + $0x108] sm:$0xff] }
  0x8f   :  { %v125_v18 = vsub.f32 1.0, %v124_v17  ;;  %215 = vmatpush.msra.mxu2 %v92_v8 }
  0x90   :  { %v51_v10 = vmul.f32 0.5, %v50_v9 }
  0x91   :  { %v126_v22 = vmul.f32 %v273_v16, %v125_v18  ;;  %v87_v18 = vld [vmem:[#allocation4 + $0xe0] sm:$0xff] }
  0x92   :  { %v52_v11 = vsub.f32 1.5, %v51_v10  ;;  %v91_v10 = vld [vmem:[#allocation4 + $0x100] sm:$0xff] }
  0x93   :  { %v127_v27 = vadd.f32 %v273_v16, %v126_v22  ;;  %216 = vmatpush.msra.mxu2 %v91_v10  ;;  %v85_v22 = vld [vmem:[#allocation4 + $0xd0] sm:$0xff] }
  0x94   :  { %v53_v12 = vmul.f32 %v271_v7, %v52_v11 }
  0x95   :  { %v362_v32 = vsel %vm128_vm4, %v273_v16, %v127_v27  ;;  %v88_v16 = vld [vmem:[#allocation4 + $0xe8] sm:$0xff] }
  0x96   :  { %v57_v13 = vsel %vm56_vm3, %v271_v7, %v53_v12  ;;  %v90_v12 = vld [vmem:[#allocation4 + $0xf8] sm:$0xff] }
  0x97   :  { %v58_v14 = vmul.f32 %v57_v13, %v41_v0  ;;  %217 = vmatpush.msra.mxu2 %v90_v12 }
  0x99   :  { %264 = vmatmul.msk.f32.vlgmr.msra.gmra.mxu0 %vm43_vm0, %v58_v14  ;;  %v89_v14 = vld [vmem:[#allocation4 + $0xf0] sm:$0xff] }
  0x9a   :  { %218 = vmatpush.msra.mxu2 %v89_v14 }
  0x9c   :  { %219 = vmatpush.msra.mxu2 %v88_v16 }
  0x9e   :  { %220 = vmatpush.msra.mxu2 %v87_v18 }
  0xa0   :  { %221 = vmatpush.msra.mxu2 %v86_v20 }
  0xa2   :  { %222 = vmatpush.msra.mxu2 %v85_v22 }
 0x116   :  { %v114_v19 = vpop.f32.mrf.mxu0 }
 0x117   :  { %v117_v21 = vrot.slane %v114_v19, 4 }
 0x119   :  { %v118_v24 = vadd.f32 %v117_v21, %v114_v19 }
 0x11b   :  { %v119_v26 = vrot.slane %v118_v24, 2 }
 0x11d   :  { %v120_v29 = vadd.f32 %v119_v26, %v118_v24  ;;  %v84_v24 = vld [vmem:[#allocation4 + $0xc8] sm:$0xff]  ;;  %v83_v26 = vld [vmem:[#allocation4 + $0xc0] sm:$0xff] }
 0x11e   :  { %223 = vmatpush.msra.mxu2 %v84_v24 }
 0x11f   :  { %v121_v31 = vrot.slane %v120_v29, 1 }
 0x120   :  { %224 = vmatpush.msra.mxu2 %v83_v26 }
 0x121   :  { %v122_v34 = vadd.f32 %v121_v31, %v120_v29 }
 0x122   :  { %225 = vmatpush.msra.mxu2 %v82_v28 }
 0x123   :  { %v130_v36 = vmul.f32 %v362_v32, %v122_v34 }
 0x124   :  { %226 = vmatpush.msra.mxu2 %v81_v30 }
 0x125   :  { %v131_v38 = vsub.f32 %v114_v19, %v130_v36  ;;  %v78_v36 = vld [vmem:[#allocation4 + $0x98] sm:$0xff] }
 0x126   :  { %227 = vmatpush.msra.mxu2 %v80_v33 }
 0x127   :  { %v132_v40 = vmul.f32 %v131_v38, %v131_v38 }
 0x128   :  { %228 = vmatpush.msra.mxu2 %v79_v35 }
 0x129   :  { %v133_v42 = vrot.slane %v132_v40, 4 }
 0x12a   :  { %229 = vmatpush.msra.mxu2 %v78_v36 }
 0x12b   :  { %v134_v44 = vadd.f32 %v133_v42, %v132_v40 }
 0x12d   :  { %v135_v46 = vrot.slane %v134_v44, 2 }
 0x12f   :  { %v136_v48 = vadd.f32 %v135_v46, %v134_v44 }
 0x131   :  { %v137_v51 = vrot.slane %v136_v48, 1 }
 0x133   :  { %v138_v53 = vadd.f32 %v137_v51, %v136_v48  ;;  %v209_v51 = vperm.slane %v366_v61, 4 }
 0x135   :  { %v139_v54 = vmul.f32 %v138_v53, %v362_v32 }
 0x137   :  { %v140_v55 = vadd.f32 1e-05, %v139_v54 }
 0x139   :  { %274 = vrsqrt.f32 %v140_v55  ;;  %vm147_vm6 = vweird.f32 %v140_v55 }
 0x13f   :  { %v275_v56 = vpop.eup %274 }
 0x140   :  { %v142_v57 = vmul.f32 %v275_v56, %v140_v55  ;;  %vm148_vm5 = vweird.f32 %v275_v56  ;;  %v214_v55 = vperm.slane %v366_v61, 0 }
 0x141   :  { %vm149_vm7 = vmor %vm147_vm6, %vm148_vm5 }
 0x142   :  { %v143_v58 = vmul.f32 %v275_v56, %v142_v57 }
 0x144   :  { %v144_v59 = vmul.f32 0.5, %v143_v58 }
 0x146   :  { %v145_v60 = vsub.f32 1.5, %v144_v59 }
 0x148   :  { %v146_v62 = vmul.f32 %v275_v56, %v145_v60 }
 0x14a   :  { %v150_v63 = vsel %vm149_vm7, %v275_v56, %v146_v62 }
 0x14b   :  { %v151_v0 = vmul.f32 %v150_v63, %v366_v61 }
 0x14d   :  { %v152_v1 = vperm.slane %v151_v0, 1 }
 0x14f   :  { %v153_v3 = vmul.f32 %v152_v1, %v131_v38  ;;  %v77_v38 = vld [vmem:[#allocation4 + $0x90] sm:$0xff] }
 0x150   :  { %230 = vmatpush.msra.mxu2 %v77_v38 }
 0x151   :  { %v155_v4 = vadd.f32 %v154_v2, %v153_v3 }
 0x153   :  { %vm156_vm8 = vcmp.gt.f32.partialorder %v155_v4, 0.0  ;;  %v157_v5 = vmul.f32 0.01, %v155_v4 }
 0x155   :  { %v158_v6 = vsel %vm156_vm8, %v155_v4, %v157_v5 }
 0x156   :  { %175 = vmatmul.f32.vlgmr.msra.gmra.mxu1 %v158_v6 }
 0x1d3   :  { %v176_v7 = vpop.f32.mrf.mxu1 }
 0x1d4   :  { %v179_v9 = vrot.slane %v176_v7, 4 }
 0x1d6   :  { %v180_v11 = vadd.f32 %v179_v9, %v176_v7 }
 0x1d8   :  { %v181_v13 = vrot.slane %v180_v11, 2 }
 0x1da   :  { %v182_v15 = vadd.f32 %v181_v13, %v180_v11 }
 0x1dc   :  { %v183_v17 = vrot.slane %v182_v15, 1 }
 0x1de   :  { %v184_v19 = vadd.f32 %v183_v17, %v182_v15 }
 0x1e0   :  { %v185_v21 = vmul.f32 %v184_v19, %v362_v32 }
 0x1e2   :  { %v186_v23 = vsub.f32 %v176_v7, %v185_v21 }
 0x1e4   :  { %v187_v25 = vmul.f32 %v186_v23, %v186_v23 }
 0x1e6   :  { %v188_v27 = vrot.slane %v187_v25, 4 }
 0x1e8   :  { %v189_v29 = vadd.f32 %v188_v27, %v187_v25 }
 0x1ea   :  { %v190_v31 = vrot.slane %v189_v29, 2 }
 0x1ec   :  { %v191_v34 = vadd.f32 %v190_v31, %v189_v29 }
 0x1ee   :  { %v192_v37 = vrot.slane %v191_v34, 1 }
 0x1f0   :  { %v193_v39 = vadd.f32 %v192_v37, %v191_v34 }
 0x1f2   :  { %v194_v40 = vmul.f32 %v193_v39, %v362_v32 }
 0x1f4   :  { %v195_v41 = vadd.f32 1e-05, %v194_v40 }
 0x1f6   :  { %276 = vrsqrt.f32 %v195_v41  ;;  %vm202_vm10 = vweird.f32 %v195_v41 }
 0x1fc   :  { %v277_v42 = vpop.eup %276 }
 0x1fd   :  { %v197_v43 = vmul.f32 %v277_v42, %v195_v41  ;;  %vm203_vm9 = vweird.f32 %v277_v42 }
 0x1fe   :  { %vm204_vm11 = vmor %vm202_vm10, %vm203_vm9 }
 0x1ff   :  { %v198_v44 = vmul.f32 %v277_v42, %v197_v43 }
 0x201   :  { %v199_v45 = vmul.f32 0.5, %v198_v44 }
 0x203   :  { %v200_v46 = vsub.f32 1.5, %v199_v45 }
 0x205   :  { %v201_v47 = vmul.f32 %v277_v42, %v200_v46 }
 0x207   :  { %v205_v48 = vsel %vm204_vm11, %v277_v42, %v201_v47 }
 0x208   :  { %v206_v49 = vmul.f32 %v205_v48, %v366_v61 }
 0x20a   :  { %v207_v50 = vperm.slane %v206_v49, 3 }
 0x20c   :  { %v208_v52 = vmul.f32 %v207_v50, %v186_v23 }
 0x20e   :  { %v210_v32 = vadd.f32 %v209_v51, %v208_v52 }
 0x210   :  { %vm211_vm12 = vcmp.gt.f32.partialorder %v210_v32, 0.0  ;;  %v212_v53 = vmul.f32 0.01, %v210_v32 }
 0x212   :  { %v213_v54 = vsel %vm211_vm12, %v210_v32, %v212_v53 }
 0x213   :  { %231 = vmatmul.f32.vlgmr.msra.gmra.mxu2 %v213_v54 }
 0x296   :  { %v232_v56 = vpop.f32.mrf.mxu2 }
 0x297   :  { %v233_v57 = vadd.f32 %v232_v56, %v214_v55 }
 0x299   :  { %235 = vmax.xlane.f32.xlu0 %v233_v57 }
 0x30c   :  { %v236_v58 = vpop.xlane.xlu0 %235 }
 0x30d   :  { %v237_v59 = vsub.f32 %v233_v57, %v236_v58 }
 0x30f   :  { %v238_v60 = vmul.f32 1.442695, %v237_v59 }
 0x311   :  { %278 = vpow2.f32 %v238_v60 }
 0x317   :  { %v279_v62 = vpop.eup %278 }
 0x318   :  { %240 = vadd.xlane.f32.xlu1 %v279_v62 }
 0x38b   :  { %v241_v63 = vpop.xlane.xlu1 %240 }
 0x38c   :  { %280 = vrcp.f32 %v241_v63  ;;  %v253_v3 = vand.u32 2147483648, %v241_v63  ;;  %v251_v5 = vand.u32 2147483647, %v241_v63  ;;  %vm247_vm14 = vweird.f32 %v241_v63 }
 0x38e   :  { %v254_v61 = vor.u32 1.1754944e-38, %v253_v3  ;;  %vm252_vm0 = vcmp.eq.f32.partialorder %v251_v5, 8.507059e+37 }
 0x392   :  { %v281_v0 = vpop.eup %280 }
 0x393   :  { %v243_v1 = vmul.f32 %v281_v0, %v241_v63  ;;  %vm248_vm13 = vweird.f32 %v281_v0 }
 0x394   :  { %vm249_vm15 = vmor %vm247_vm14, %vm248_vm13 }
 0x395   :  { %v244_v2 = vsub.f32 1.0, %v243_v1 }
 0x397   :  { %v245_v4 = vmul.f32 %v281_v0, %v244_v2 }
 0x399   :  { %v246_v6 = vadd.f32 %v281_v0, %v245_v4 }
 0x39b   :  { %v250_v7 = vsel %vm249_vm15, %v281_v0, %v246_v6 }
 0x39c   :  { %v255_v8 = vsel %vm252_vm0, %v254_v61, %v250_v7 }
 0x39d   :  { %v256_v9 = vmul.f32 %v279_v62, %v255_v8 }
 0x39f   :  { %257 = vst [vmem:[%s380_s2] sm:$0xff] %v256_v9 }
 0x3a0   :  { %262 = vsyncpa [#allocation3], 1 }
 0x3a1   :  { %263 = vsyncpa [#allocation5], 1 }

</bundles_post_ra>
